<compile_context>
chip_gen: v5e
topology: v5e:2x2
jax: 0.10.0
libtpu: 0.0.40
codegen_flags: <defaults>
</compile_context>

<pallas_src>
import functools
import math

import jax
import jax.numpy as jnp
from jax import lax
from jax.experimental import pallas as pl
from jax.experimental.pallas import tpu as pltpu

_VMEM = pl.BlockSpec(memory_space=pltpu.MemorySpace.VMEM)
_SMEM = pl.BlockSpec(memory_space=pltpu.MemorySpace.SMEM)


# -----------------------------------------------------------------------------
# Pallas kernels (fused)
# -----------------------------------------------------------------------------
def _mlp3_kernel(x_ref, w0_ref, b0_ref, s0_ref, t0_ref,
                 w1_ref, b1_ref, s1_ref, t1_ref, w2_ref, b2_ref, o_ref):
    """y = L2( relu(BN1( L1( relu(BN0( L0(x) )) ) )) )  (dropout = identity)."""
    x = x_ref[...]
    h = jnp.dot(x.astype(jnp.bfloat16), w0_ref[...],
                preferred_element_type=jnp.float32) + b0_ref[...]
    h = jnp.maximum(h * s0_ref[...] + t0_ref[...], 0.0)
    h = jnp.dot(h.astype(jnp.bfloat16), w1_ref[...],
                preferred_element_type=jnp.float32) + b1_ref[...]
    h = jnp.maximum(h * s1_ref[...] + t1_ref[...], 0.0)
    y = jnp.dot(h.astype(jnp.bfloat16), w2_ref[...],
                preferred_element_type=jnp.float32) + b2_ref[...]
    o_ref[...] = y.astype(o_ref.dtype)


def _gine_kernel(x_ref, ve_ref, bat_col_ref, src_col_ref, dst_row_ref, ea_ref,
                 lw_ref, lb_ref, w0_ref, b0_ref, s0_ref, t0_ref, w1_ref, b1_ref,
                 eps_ref, xin_ref, o_ref, *, gp, virtual, residual):
    """Fused GNN layer:
       xin = x (+ virtual_embed[batch])
       conv = scatter_add(dst, relu(xin[src] + Linear(edge_attr))) + (1+eps)*xin
       out  = Linear(relu(BN(Linear(conv))))  (+ xin residual)"""
    x = x_ref[...]
    npad = x.shape[0]
    ep = ea_ref.shape[0]

    if virtual:
        # gather virtual_embed[batch] as a one-hot (N, G) @ (G, H) matmul
        oh_ng = jnp.where(
            bat_col_ref[...] == lax.broadcasted_iota(jnp.int32, (npad, gp), 1),
            1.0, 0.0).astype(jnp.bfloat16)
        ve_n = jnp.dot(oh_ng, ve_ref[...].astype(jnp.bfloat16),
                       preferred_element_type=jnp.float32)
        xin = x + ve_n
    else:
        xin = x
    xin_ref[...] = xin.astype(xin_ref.dtype)

    # edge embedding: Linear(edge_dim -> hidden)
    eemb = jnp.dot(ea_ref[...].astype(jnp.bfloat16), lw_ref[...],
                   preferred_element_type=jnp.float32) + lb_ref[...]

    # gather xin[src]  (one-hot (E, N) built in-kernel)
    oh_en = jnp.where(
        src_col_ref[...] == lax.broadcasted_iota(jnp.int32, (ep, npad), 1),
        1.0, 0.0).astype(jnp.bfloat16)
    x_src = jnp.dot(oh_en, xin.astype(jnp.bfloat16),
                    preferred_element_type=jnp.float32)
    msg = jnp.maximum(x_src + eemb, 0.0)

    # scatter-add messages into dst nodes  (one-hot (N, E) built in-kernel)
    oh_ne = jnp.where(
        dst_row_ref[...] == lax.broadcasted_iota(jnp.int32, (npad, ep), 0),
        1.0, 0.0).astype(jnp.bfloat16)
    agg = jnp.dot(oh_ne, msg.astype(jnp.bfloat16),
                  preferred_element_type=jnp.float32)

    conv = agg + (1.0 + eps_ref[0, 0]) * xin

    # nn: Linear -> BN(eval) -> ReLU -> Linear -> Dropout(id)
    h = jnp.dot(conv.astype(jnp.bfloat16), w0_ref[...],
                preferred_element_type=jnp.float32) + b0_ref[...]
    h = jnp.maximum(h * s0_ref[...] + t0_ref[...], 0.0)
    y = jnp.dot(h.astype(jnp.bfloat16), w1_ref[...],
                preferred_element_type=jnp.float32) + b1_ref[...]
    if residual:
        y = y + xin
    o_ref[...] = y.astype(o_ref.dtype)


def _virtual_kernel(x_ref, bat_row_ref, ve_ref,
                    w0_ref, b0_ref, s0_ref, t0_ref,
                    w1_ref, b1_ref, s1_ref, t1_ref,
                    w2_ref, b2_ref, o_ref, *, gp, residual):
    """ve_new = ve + MLP3(global_add_pool(x, batch) + ve)  (residual optional)."""
    npad = x_ref.shape[0]
    oh_gn = jnp.where(
        bat_row_ref[...] == lax.broadcasted_iota(jnp.int32, (gp, npad), 0),
        1.0, 0.0).astype(jnp.bfloat16)
    pooled = jnp.dot(oh_gn, x_ref[...].astype(jnp.bfloat16),
                     preferred_element_type=jnp.float32)
    z = pooled + ve_ref[...]
    h = jnp.dot(z.astype(jnp.bfloat16), w0_ref[...],
                preferred_element_type=jnp.float32) + b0_ref[...]
    h = jnp.maximum(h * s0_ref[...] + t0_ref[...], 0.0)
    h = jnp.dot(h.astype(jnp.bfloat16), w1_ref[...],
                preferred_element_type=jnp.float32) + b1_ref[...]
    h = jnp.maximum(h * s1_ref[...] + t1_ref[...], 0.0)
    vt = jnp.dot(h.astype(jnp.bfloat16), w2_ref[...],
                 preferred_element_type=jnp.float32) + b2_ref[...]
    out = ve_ref[...] + vt if residual else vt
    o_ref[...] = out.astype(o_ref.dtype)


def _out_kernel(*refs, num_slabs, gp, mean_pool):
    """out_layer MLP3 over x_list slabs (partial matmuls, no concat) + final pool."""
    slabs = refs[:num_slabs]
    wchunks = refs[num_slabs:2 * num_slabs]
    (b0_ref, s0_ref, t0_ref, w1_ref, b1_ref, s1_ref, t1_ref, w2_ref, b2_ref,
     bat_row_ref, invc_ref, nodes_ref, graph_ref) = refs[2 * num_slabs:]

    acc = b0_ref[...]
    for xr, wr in zip(slabs, wchunks):
        acc = acc + jnp.dot(xr[...].astype(jnp.bfloat16), wr[...],
                            preferred_element_type=jnp.float32)
    h = jnp.maximum(acc * s0_ref[...] + t0_ref[...], 0.0)
    h = jnp.dot(h.astype(jnp.bfloat16), w1_ref[...],
                preferred_element_type=jnp.float32) + b1_ref[...]
    h = jnp.maximum(h * s1_ref[...] + t1_ref[...], 0.0)
    y = jnp.dot(h.astype(jnp.bfloat16), w2_ref[...],
                preferred_element_type=jnp.float32) + b2_ref[...]
    nodes_ref[...] = y.astype(nodes_ref.dtype)

    npad = y.shape[0]
    oh_gn = jnp.where(
        bat_row_ref[...] == lax.broadcasted_iota(jnp.int32, (gp, npad), 0),
        1.0, 0.0).astype(jnp.bfloat16)
    pooled = jnp.dot(oh_gn, y.astype(jnp.bfloat16),
                     preferred_element_type=jnp.float32)
    if mean_pool:
        pooled = pooled * invc_ref[...]
    graph_ref[...] = pooled.astype(graph_ref.dtype)


# -----------------------------------------------------------------------------
# pallas_call wrappers (single full-array block per call; sizes are small)
# -----------------------------------------------------------------------------
def mlp3_op(p, x, dout_p):
    npad = x.shape[0]
    return pl.pallas_call(
        _mlp3_kernel,
        out_shape=jax.ShapeDtypeStruct((npad, dout_p), jnp.float32),
    )(x, p['w0'], p['b0'], p['s0'], p['t0'],
      p['w1'], p['b1'], p['s1'], p['t1'], p['w2'], p['b2'])


def gine_layer_op(p, x, ve, bat_col, src_col, dst_row, ea, *, gp, virtual, residual):
    npad, hp = x.shape
    kernel = functools.partial(_gine_kernel, gp=gp, virtual=virtual, residual=residual)
    return pl.pallas_call(
        kernel,
        out_shape=(jax.ShapeDtypeStruct((npad, hp), jnp.float32),
                   jax.ShapeDtypeStruct((npad, hp), jnp.float32)),
        in_specs=[_VMEM] * 14 + [_SMEM],            # eps lives in SMEM
        out_specs=(_VMEM, _VMEM),
    )(x, ve, bat_col, src_col, dst_row, ea,
      p['lw'], p['lb'], p['w0'], p['b0'], p['s'], p['t'], p['w1'], p['b1'], p['eps'])


def virtual_update_op(p, x_nodes, bat_row, ve, *, gp, residual):
    npad, hp = x_nodes.shape
    kernel = functools.partial(_virtual_kernel, gp=gp, residual=residual)
    return pl.pallas_call(
        kernel,
        out_shape=jax.ShapeDtypeStruct((gp, hp), jnp.float32),
    )(x_nodes, bat_row, ve,
      p['w0'], p['b0'], p['s0'], p['t0'],
      p['w1'], p['b1'], p['s1'], p['t1'], p['w2'], p['b2'])


def out_layer_op(p, slabs, bat_row, inv_counts, *, gp, mean_pool):
    npad = slabs[0].shape[0]
    outp = p['w2'].shape[1]
    kernel = functools.partial(_out_kernel, num_slabs=len(slabs), gp=gp,
                               mean_pool=mean_pool)
    return pl.pallas_call(
        kernel,
        out_shape=(jax.ShapeDtypeStruct((npad, outp), jnp.float32),
                   jax.ShapeDtypeStruct((gp, outp), jnp.float32)),
    )(*slabs, *p['w0_chunks'], p['b0'], p['s0'], p['t0'],
      p['w1'], p['b1'], p['s1'], p['t1'], p['w2'], p['b2'],
      bat_row, inv_counts)


# -----------------------------------------------------------------------------
# Parameter construction (deterministic, PyTorch-Linear-style uniform init)
# -----------------------------------------------------------------------------
def _init_linear(key, din, dout):
    k1, k2 = jax.random.split(key)
    lim = 1.0 / math.sqrt(din)
    w = jax.random.uniform(k1, (din, dout), jnp.float32, -lim, lim)
    b = jax.random.uniform(k2, (1, dout), jnp.float32, -lim, lim)
    return w, b


def _bn_eval(dim, eps=1e-5):
    gamma = jnp.ones((1, dim), jnp.float32)
    beta = jnp.zeros((1, dim), jnp.float32)
    mean = jnp.zeros((1, dim), jnp.float32)
    var = jnp.ones((1, dim), jnp.float32)
    scale = gamma / jnp.sqrt(var + eps)
    shift = beta - mean * scale
    return scale, shift


def _init_mlp(key, din, hidden, dout):
    k0, k1, k2 = jax.random.split(key, 3)
    w0, b0 = _init_linear(k0, din, hidden)
    w1, b1 = _init_linear(k1, hidden, hidden)
    w2, b2 = _init_linear(k2, hidden, dout)
    bn0s, bn0h = _bn_eval(hidden)
    bn1s, bn1h = _bn_eval(hidden)
    return dict(w0=w0, b0=b0, w1=w1, b1=b1, w2=w2, b2=b2,
                bn0s=bn0s, bn0h=bn0h, bn1s=bn1s, bn1h=bn1h)


def _init_gine_layer(key, hidden, edge_dim):
    k0, k1, k2 = jax.random.split(key, 3)
    lw, lb = _init_linear(k0, edge_dim, hidden)      # edge_attr -> hidden
    w0, b0 = _init_linear(k1, hidden, hidden)        # nn: Linear
    w1, b1 = _init_linear(k2, hidden, hidden)        # nn: Linear (after BN+ReLU)
    bns, bnh = _bn_eval(hidden)
    eps = jnp.zeros((1, 1), jnp.float32)             # train_eps=True, init 0
    return dict(lw=lw, lb=lb, w0=w0, b0=b0, w1=w1, b1=b1, bns=bns, bnh=bnh, eps=eps)


def init_gin_virtual(key, in_channels, out_channels, hidden, edge_dim, depth):
    keys = jax.random.split(key, 2 + 2 * depth)
    return dict(
        dims=dict(in_channels=in_channels, out_channels=out_channels,
                  hidden=hidden, edge_dim=edge_dim, depth=depth),
        in_layer=_init_mlp(keys[0], in_channels, hidden, hidden),
        out_layer=_init_mlp(keys[1], in_channels + hidden * (depth + 1),
                            hidden, out_channels),
        virtual_embed=jnp.zeros((1, hidden), jnp.float32),  # nn.init.constant_(.., 0)
        gnn=[_init_gine_layer(keys[2 + i], hidden, edge_dim) for i in range(depth)],
        virt=[_init_mlp(keys[2 + depth + i], hidden, hidden, hidden)
              for i in range(depth)],
    )


# -----------------------------------------------------------------------------
# Padding / preparation glue (lane-pad to 128, rows to 8, weights -> bf16)
# -----------------------------------------------------------------------------
def _pad2(a, rows, cols):
    a = a.astype(jnp.float32)
    r, c = a.shape
    return jnp.pad(a, ((0, rows - r), (0, cols - c)))


def _prep_mlp(p, dinp, hp, doutp):
    return dict(
        w0=_pad2(p['w0'], dinp, hp).astype(jnp.bfloat16), b0=_pad2(p['b0'], 1, hp),
        s0=_pad2(p['bn0s'], 1, hp), t0=_pad2(p['bn0h'], 1, hp),
        w1=_pad2(p['w1'], hp, hp).astype(jnp.bfloat16), b1=_pad2(p['b1'], 1, hp),
        s1=_pad2(p['bn1s'], 1, hp), t1=_pad2(p['bn1h'], 1, hp),
        w2=_pad2(p['w2'], hp, doutp).astype(jnp.bfloat16), b2=_pad2(p['b2'], 1, doutp),
    )


def _prep_gine(p, edp, hp):
    return dict(
        lw=_pad2(p['lw'], edp, hp).astype(jnp.bfloat16), lb=_pad2(p['lb'], 1, hp),
        w0=_pad2(p['w0'], hp, hp).astype(jnp.bfloat16), b0=_pad2(p['b0'], 1, hp),
        s=_pad2(p['bns'], 1, hp), t=_pad2(p['bnh'], 1, hp),
        w1=_pad2(p['w1'], hp, hp).astype(jnp.bfloat16), b1=_pad2(p['b1'], 1, hp),
        eps=p['eps'].astype(jnp.float32),                      # (1,1) scalar -> SMEM
    )


def _prep_out(p, in_ch, hidden, depth, inp, hp, outp):
    w0 = p['w0']
    chunks = [_pad2(w0[:in_ch], inp, hp).astype(jnp.bfloat16)]
    for k in range(depth + 1):
        rs = in_ch + k * hidden
        chunks.append(_pad2(w0[rs:rs + hidden], hp, hp).astype(jnp.bfloat16))
    return dict(
        w0_chunks=chunks, b0=_pad2(p['b0'], 1, hp),
        s0=_pad2(p['bn0s'], 1, hp), t0=_pad2(p['bn0h'], 1, hp),
        w1=_pad2(p['w1'], hp, hp).astype(jnp.bfloat16), b1=_pad2(p['b1'], 1, hp),
        s1=_pad2(p['bn1s'], 1, hp), t1=_pad2(p['bn1h'], 1, hp),
        w2=_pad2(p['w2'], hp, outp).astype(jnp.bfloat16), b2=_pad2(p['b2'], 1, outp),
    )


# -----------------------------------------------------------------------------
# Forward pass
# -----------------------------------------------------------------------------
def gin_virtual_forward(params, x, edge_index, edge_attr, batch, *,
                        residual=True, virtual=True, pooling='mean',
                        num_graphs=None):
    dims = params['dims']
    depth, hidden = dims['depth'], dims['hidden']
    in_ch, out_ch, edge_dim = dims['in_channels'], dims['out_channels'], dims['edge_dim']
    n = x.shape[0]
    e = edge_index.shape[1]
    if num_graphs is None:
        num_graphs = int(batch[-1]) + 1   # pass num_graphs explicitly to allow jit

    def rup(v, m):
        return ((v + m - 1) // m) * m

    LANE = 128
    Np, Ep, Gp = max(rup(n, 8), 8), max(rup(e, 8), 8), max(rup(num_graphs, 8), 8)
    INP, HP = rup(in_ch, LANE), rup(hidden, LANE)
    EDP, OUTP = rup(edge_dim, LANE), rup(out_ch, LANE)

    # ---- pad inputs; sentinel indices for padded rows so they never match ----
    xp = _pad2(x, Np, INP)
    eap = _pad2(edge_attr, Ep, EDP)
    src = jnp.full((Ep,), Np, jnp.int32).at[:e].set(edge_index[0].astype(jnp.int32))
    dst = jnp.full((Ep,), Np, jnp.int32).at[:e].set(edge_index[1].astype(jnp.int32))
    bat = jnp.full((Np,), Gp, jnp.int32).at[:n].set(batch.astype(jnp.int32))
    src_col, dst_row = src.reshape(Ep, 1), dst.reshape(1, Ep)
    bat_col, bat_row = bat.reshape(Np, 1), bat.reshape(1, Np)
    counts = jnp.zeros((num_graphs,), jnp.float32).at[batch].add(1.0)
    inv_counts = _pad2((1.0 / jnp.maximum(counts, 1.0)).reshape(num_graphs, 1), Gp, 1)

    # ---- pad params (weights pre-cast to bf16 for the MXU) ----
    in_p = _prep_mlp(params['in_layer'], INP, HP, HP)
    out_p = _prep_out(params['out_layer'], in_ch, hidden, depth, INP, HP, OUTP)
    gnn_p = [_prep_gine(p, EDP, HP) for p in params['gnn']]
    virt_p = [_prep_mlp(p, HP, HP, HP) for p in params['virt']]

    virtual_embed = jnp.broadcast_to(_pad2(params['virtual_embed'], 1, HP),
                                     (Gp, HP)).astype(jnp.float32)

    x_list = [xp, mlp3_op(in_p, xp, HP)]

    for i in range(depth):
        xin, h = gine_layer_op(gnn_p[i], x_list[-1], virtual_embed, bat_col,
                               src_col, dst_row, eap,
                               gp=Gp, virtual=virtual, residual=residual)
        x_list[-1] = xin          # x_list[-1] + virtual_embed[batch]
        x_list.append(h)          # conv output (+ residual), fused in kernel
        if virtual:
            virtual_embed = virtual_update_op(virt_p[i], h, bat_row, virtual_embed,
                                              gp=Gp, residual=residual)

    nodes_p, graphs_p = out_layer_op(out_p, x_list, bat_row, inv_counts,
                                     gp=Gp, mean_pool=(pooling == 'mean'))
    return nodes_p[:n, :out_ch], graphs_p[:num_graphs, :out_ch]


# -----------------------------------------------------------------------------
if __name__ == "__main__":
    in_channels, out_channels, hidden, edge_dim, depth = 16, 8, 32, 8, 2
    N, E, G = 12, 24, 3

    key = jax.random.PRNGKey(0)
    kx, ke, kei, kp = jax.random.split(key, 4)

    x = jax.random.normal(kx, (N, in_channels), jnp.float32)
    edge_attr = jax.random.normal(ke, (E, edge_dim), jnp.float32)
    edge_index = jax.random.randint(kei, (2, E), 0, N, jnp.int32)
    batch = jnp.repeat(jnp.arange(G, dtype=jnp.int32), N // G)   # [0,0,0,0,1,...,2]

    params = init_gin_virtual(kp, in_channels, out_channels, hidden, edge_dim, depth)

    nodes_reps, graph_reps = gin_virtual_forward(
        params, x, edge_index, edge_attr, batch,
        residual=True, virtual=True, pooling='mean', num_graphs=G)

    jax.block_until_ready((nodes_reps, graph_reps))
    assert nodes_reps.shape == (N, out_channels)
    assert graph_reps.shape == (G, out_channels)
    print("KERNEL_OK")
</pallas_src>

<mosaic_0001>
module attributes {stable_mosaic.version = 11 : i64} {
  func.func @_mlp3_kernel(%arg0: memref<16x128xf32, #tpu.memory_space<vmem>>, %arg1: memref<128x128xbf16, #tpu.memory_space<vmem>>, %arg2: memref<1x128xf32, #tpu.memory_space<vmem>>, %arg3: memref<1x128xf32, #tpu.memory_space<vmem>>, %arg4: memref<1x128xf32, #tpu.memory_space<vmem>>, %arg5: memref<128x128xbf16, #tpu.memory_space<vmem>>, %arg6: memref<1x128xf32, #tpu.memory_space<vmem>>, %arg7: memref<1x128xf32, #tpu.memory_space<vmem>>, %arg8: memref<1x128xf32, #tpu.memory_space<vmem>>, %arg9: memref<128x128xbf16, #tpu.memory_space<vmem>>, %arg10: memref<1x128xf32, #tpu.memory_space<vmem>>, %arg11: memref<16x128xf32, #tpu.memory_space<vmem>>) attributes {dimension_semantics = [], scalar_prefetch = 0 : i64, scratch_operands = 0 : i64, tpu.core_type = #tpu.core_type<tc>} {
    %c0 = arith.constant 0 : index
    %c0_0 = arith.constant 0 : index
    %0 = vector.load %arg0[%c0, %c0_0] : memref<16x128xf32, #tpu.memory_space<vmem>>, vector<16x128xf32>
    %1 = arith.truncf %0 : vector<16x128xf32> to vector<16x128xbf16>
    %c0_1 = arith.constant 0 : index
    %c0_2 = arith.constant 0 : index
    %2 = vector.load %arg1[%c0_1, %c0_2] : memref<128x128xbf16, #tpu.memory_space<vmem>>, vector<128x128xbf16>
    %cst = arith.constant dense<0.000000e+00> : vector<16x128xf32>
    %3 = tpu.matmul %1, %2, %cst {dimension_numbers = #tpu.dot_dimension_numbers<[1], [0], [0], [1], [0, 0, 1, 1], [], []>} : vector<16x128xbf16>, vector<128x128xbf16>, vector<16x128xf32> -> vector<16x128xf32>
    %c0_3 = arith.constant 0 : index
    %c0_4 = arith.constant 0 : index
    %4 = vector.load %arg2[%c0_3, %c0_4] : memref<1x128xf32, #tpu.memory_space<vmem>>, vector<1x128xf32>
    %5 = vector.broadcast %4 : vector<1x128xf32> to vector<16x128xf32>
    %6 = arith.addf %3, %5 : vector<16x128xf32>
    %c0_5 = arith.constant 0 : index
    %c0_6 = arith.constant 0 : index
    %7 = vector.load %arg3[%c0_5, %c0_6] : memref<1x128xf32, #tpu.memory_space<vmem>>, vector<1x128xf32>
    %8 = vector.broadcast %7 : vector<1x128xf32> to vector<16x128xf32>
    %9 = arith.mulf %6, %8 : vector<16x128xf32>
    %c0_7 = arith.constant 0 : index
    %c0_8 = arith.constant 0 : index
    %10 = vector.load %arg4[%c0_7, %c0_8] : memref<1x128xf32, #tpu.memory_space<vmem>>, vector<1x128xf32>
    %11 = vector.broadcast %10 : vector<1x128xf32> to vector<16x128xf32>
    %12 = arith.addf %9, %11 : vector<16x128xf32>
    %cst_9 = arith.constant 0.000000e+00 : f32
    %13 = vector.broadcast %cst_9 : f32 to vector<16x128xf32>
    %14 = arith.maximumf %12, %13 : vector<16x128xf32>
    %15 = arith.truncf %14 : vector<16x128xf32> to vector<16x128xbf16>
    %c0_10 = arith.constant 0 : index
    %c0_11 = arith.constant 0 : index
    %16 = vector.load %arg5[%c0_10, %c0_11] : memref<128x128xbf16, #tpu.memory_space<vmem>>, vector<128x128xbf16>
    %cst_12 = arith.constant dense<0.000000e+00> : vector<16x128xf32>
    %17 = tpu.matmul %15, %16, %cst_12 {dimension_numbers = #tpu.dot_dimension_numbers<[1], [0], [0], [1], [0, 0, 1, 1], [], []>} : vector<16x128xbf16>, vector<128x128xbf16>, vector<16x128xf32> -> vector<16x128xf32>
    %c0_13 = arith.constant 0 : index
    %c0_14 = arith.constant 0 : index
    %18 = vector.load %arg6[%c0_13, %c0_14] : memref<1x128xf32, #tpu.memory_space<vmem>>, vector<1x128xf32>
    %19 = vector.broadcast %18 : vector<1x128xf32> to vector<16x128xf32>
    %20 = arith.addf %17, %19 : vector<16x128xf32>
    %c0_15 = arith.constant 0 : index
    %c0_16 = arith.constant 0 : index
    %21 = vector.load %arg7[%c0_15, %c0_16] : memref<1x128xf32, #tpu.memory_space<vmem>>, vector<1x128xf32>
    %22 = vector.broadcast %21 : vector<1x128xf32> to vector<16x128xf32>
    %23 = arith.mulf %20, %22 : vector<16x128xf32>
    %c0_17 = arith.constant 0 : index
    %c0_18 = arith.constant 0 : index
    %24 = vector.load %arg8[%c0_17, %c0_18] : memref<1x128xf32, #tpu.memory_space<vmem>>, vector<1x128xf32>
    %25 = vector.broadcast %24 : vector<1x128xf32> to vector<16x128xf32>
    %26 = arith.addf %23, %25 : vector<16x128xf32>
    %cst_19 = arith.constant 0.000000e+00 : f32
    %27 = vector.broadcast %cst_19 : f32 to vector<16x128xf32>
    %28 = arith.maximumf %26, %27 : vector<16x128xf32>
    %29 = arith.truncf %28 : vector<16x128xf32> to vector<16x128xbf16>
    %c0_20 = arith.constant 0 : index
    %c0_21 = arith.constant 0 : index
    %30 = vector.load %arg9[%c0_20, %c0_21] : memref<128x128xbf16, #tpu.memory_space<vmem>>, vector<128x128xbf16>
    %cst_22 = arith.constant dense<0.000000e+00> : vector<16x128xf32>
    %31 = tpu.matmul %29, %30, %cst_22 {dimension_numbers = #tpu.dot_dimension_numbers<[1], [0], [0], [1], [0, 0, 1, 1], [], []>} : vector<16x128xbf16>, vector<128x128xbf16>, vector<16x128xf32> -> vector<16x128xf32>
    %c0_23 = arith.constant 0 : index
    %c0_24 = arith.constant 0 : index
    %32 = vector.load %arg10[%c0_23, %c0_24] : memref<1x128xf32, #tpu.memory_space<vmem>>, vector<1x128xf32>
    %33 = vector.broadcast %32 : vector<1x128xf32> to vector<16x128xf32>
    %34 = arith.addf %31, %33 : vector<16x128xf32>
    %c0_25 = arith.constant 0 : index
    %c0_26 = arith.constant 0 : index
    %35 = vector.load %arg11[%c0_25, %c0_26] : memref<16x128xf32, #tpu.memory_space<vmem>>, vector<16x128xf32>
    tpu.vector_store %arg11[%c0_25, %c0_26], %34 {strides = array<i32>} : memref<16x128xf32, #tpu.memory_space<vmem>>, vector<16x128xf32>,
    return
  }
}

</mosaic_0001>

<bundles_post_ra>
// kernel: tpu_custom_call.1
= control target key start
LH: loop header
LB: loop body
LE: loop exit
PB: predicated region body
PF: predicated region fallthrough
CT: control target
= control target key end

     0   :  { %16 = vsyncpa [#allocation3], 0  ;;  %s779_s0 = inlined_call_operand.hbm [shape: f32[16,128], index: 0, kind: input, shape index: {}]   ;;  %s780_s1 = inlined_call_operand.hbm [shape: bf16[128,128], index: 1, kind: input, shape index: {}]   ;;  %s781_s2 = inlined_call_operand.vmem [shape: f32[1,128], index: 2, kind: input, shape index: {}]   ;;  %s782_s3 = inlined_call_operand.vmem [shape: f32[1,128], index: 3, kind: input, shape index: {}]   ;;  %s783_s4 = inlined_call_operand.vmem [shape: f32[1,128], index: 4, kind: input, shape index: {}]   ;;  %s784_s5 = inlined_call_operand.hbm [shape: bf16[128,128], index: 5, kind: input, shape index: {}]   ;;  %s785_s6 = inlined_call_operand.vmem [shape: f32[1,128], index: 6, kind: input, shape index: {}]   ;;  %s786_s7 = inlined_call_operand.vmem [shape: f32[1,128], index: 7, kind: input, shape index: {}]   ;;  %s787_s8 = inlined_call_operand.vmem [shape: f32[1,128], index: 8, kind: input, shape index: {}]   ;;  %s788_s9 = inlined_call_operand.hbm [shape: bf16[128,128], index: 9, kind: input, shape index: {}]   ;;  %s789_s10 = inlined_call_operand.vmem [shape: f32[1,128], index: 10, kind: input, shape index: {}]   ;;  %s790_s11 = inlined_call_operand.hbm [shape: f32[16,128], index: 11, kind: output, shape index: {}]  }
   0x1   :  { %17 = vsyncpa [#allocation6], 0 }
   0x2   :  { %18 = vsyncpa [#allocation9], 0  ;;  %s37_s19 = sshll.u32 %s780_s1, 4  ;;  %s38_s19 = int_to_ptr.hbm [resolvable:$true] %s37_s19 }
   0x3   :  { %19 = vsyncpa [#allocation4], 0  ;;  %s668_s20 = smov [#allocation5]   ;;  %s24_s24 = sshll.u32 %s779_s0, 4  ;;  %s25_s24 = int_to_ptr.hbm [resolvable:$true] %s24_s24 }
   0x4   :  { %s39_s21 = sshll.u32 %s668_s20, 4  ;;  %s669_s25 = smov 64   ;;  %s40_s21 = int_to_ptr.vmem [resolvable:$true] %s39_s21 }
   0x5   :  { %s670_s26 = smov 4   ;;  %s671_s27 = smov [#allocation2]  }
   0x6   :  { %45 = dma.hbm_to_vmem [thread:$0]  %s38_s19, 1024, %s40_s21, [#allocation6], %s669_s25, %s669_s25, %s670_s26  }
   0x7   :  { %s26_s28 = sshll.u32 %s671_s27, 4  ;;  %s672_s29 = smov 128   ;;  %s27_s28 = int_to_ptr.vmem [resolvable:$true] %s26_s28 }
   0x8   :  { %s673_s30 = smov 8   ;;  %s56_s13 = sshll.u32 %s784_s5, 4  ;;  %s57_s13 = int_to_ptr.hbm [resolvable:$true] %s56_s13 }
   0x9   :  { %32 = dma.hbm_to_vmem [thread:$0]  %s25_s24, 256, %s27_s28, [#allocation3], %s672_s29, %s672_s29, %s673_s30  }
   0xa   :  { %s674_s14 = smov [#allocation7]   ;;  %s75_s17 = sshll.u32 %s788_s9, 4  ;;  %s76_s17 = int_to_ptr.hbm [resolvable:$true] %s75_s17 }
   0xb   :  { %s58_s0 = sshll.u32 %s674_s14, 4  ;;  %s675_s18 = smov [#allocation8]   ;;  %s59_s0 = int_to_ptr.vmem [resolvable:$true] %s58_s0 }
   0xc   :  { %64 = dma.hbm_to_vmem [thread:$0]  %s57_s13, 1024, %s59_s0, [#allocation6], %s669_s25, %s669_s25, %s670_s26  }
   0xd   :  { %s77_s19 = sshll.u32 %s675_s18, 4  ;;  %s78_s19 = int_to_ptr.vmem [resolvable:$true] %s77_s19 }
   0xe   :  { %83 = dma.hbm_to_vmem [thread:$0]  %s76_s17, 1024, %s78_s19, [#allocation9], %s669_s25, %s669_s25, %s670_s26  }
   0xf   :  { %660 = dma.done.wait [#allocation3], 256  }
  0x10   :  { %661 = vsyncadd [#allocation3], 4294967040 }
  0x11   :  { %662 = dma.done.wait [#allocation6], 2048  }
  0x12   :  { %663 = vsyncadd [#allocation6], 4294965248 }
  0x13   :  { %664 = dma.done.wait [#allocation9], 1024  }
  0x14   :  { %665 = vsyncadd [#allocation9], 4294966272  ;;  %v507_v0 = vld [vmem:[#allocation5 + $0x38] sm:$0xff]  ;;  %v506_v1 = vld [vmem:[#allocation5 + $0x30] sm:$0xff]  ;;  %s389_s12 = sshll.u32 %s790_s11, 4  ;;  %s390_s12 = int_to_ptr.hbm [resolvable:$true] %s389_s12 }
  0x15   :  { %173 = vmatpush.bf16.msra.mxu0 %v507_v0  ;;  %v515_v2 = vld [vmem:[#allocation7 + $0x38] sm:$0xff]  ;;  %v505_v3 = vld [vmem:[#allocation5 + $0x28] sm:$0xff]  ;;  %v514_v4 = vld [vmem:[#allocation7 + $0x30] sm:$0xff] }
  0x16   :  { %270 = vmatpush.bf16.msra.mxu1 %v515_v2  ;;  %v513_v5 = vld [vmem:[#allocation7 + $0x28] sm:$0xff]  ;;  %v504_v6 = vld [vmem:[#allocation5 + $0x20] sm:$0xff]  ;;  %v503_v7 = vld [vmem:[#allocation5 + $0x18] sm:$0xff] }
  0x17   :  { %v502_v8 = vld [vmem:[#allocation5 + $0x10] sm:$0xff]  ;;  %v501_v9 = vld [vmem:[#allocation5 + $0x8] sm:$0xff]  ;;  %v500_v10 = vld [vmem:[#allocation5] sm:$0xff] }
  0x18   :  { %v102_v11 = vld [vmem:[#allocation2] sm:$0xff]  ;;  %v103_v12 = vld [vmem:[#allocation2 + $0x8] sm:$0xff]  ;;  %v512_v14 = vld [vmem:[#allocation7 + $0x20] sm:$0xff] }
  0x19   :  { %174 = vmatpush.bf16.msra.mxu0 %v506_v1  ;;  %v104_v13 = vpack.c.bf16 %v103_v12, %v102_v11  ;;  %v511_v15 = vld [vmem:[#allocation7 + $0x18] sm:$0xff]  ;;  %v510_v16 = vld [vmem:[#allocation7 + $0x10] sm:$0xff]  ;;  %v509_v17 = vld [vmem:[#allocation7 + $0x8] sm:$0xff] }
  0x1a   :  { %271 = vmatpush.bf16.msra.mxu1 %v514_v4  ;;  %v508_v18 = vld [vmem:[#allocation7] sm:$0xff]  ;;  %v523_v19 = vld [vmem:[#allocation8 + $0x38] sm:$0xff]  ;;  %v522_v20 = vld [vmem:[#allocation8 + $0x30] sm:$0xff] }
  0x1b   :  { %367 = vmatpush.bf16.msra.mxu2 %v523_v19  ;;  %v521_v21 = vld [vmem:[#allocation8 + $0x28] sm:$0xff]  ;;  %v533_v22 = vld [vmem:[%s781_s2] ss:$0 sm:$0xff]  ;;  %v520_v36 = vld [vmem:[#allocation8 + $0x20] sm:$0xff] }
  0x1c   :  { %v534_v25 = vld [vmem:[%s782_s3] ss:$0 sm:$0xff]  ;;  %v519_v37 = vld [vmem:[#allocation8 + $0x18] sm:$0xff]  ;;  %v517_v39 = vld [vmem:[#allocation8 + $0x8] sm:$0xff] }
  0x1d   :  { %175 = vmatpush.bf16.msra.mxu0 %v505_v3  ;;  %v535_v27 = vld [vmem:[%s783_s4] ss:$0 sm:$0xff]  ;;  %v516_v40 = vld [vmem:[#allocation8] sm:$0xff] }
  0x1e   :  { %272 = vmatpush.bf16.msra.mxu1 %v513_v5  ;;  %v518_v38 = vld [vmem:[#allocation8 + $0x10] sm:$0xff] }
  0x1f   :  { %368 = vmatpush.bf16.msra.mxu2 %v522_v20  ;;  %v536_v41 = vld [vmem:[%s785_s6] ss:$0 sm:$0xff] }
  0x20   :  { %v537_v44 = vld [vmem:[%s786_s7] ss:$0 sm:$0xff]  ;;  %s676_s7 = smov [#allocation10]  }
  0x21   :  { %176 = vmatpush.bf16.msra.mxu0 %v504_v6  ;;  %v538_v46 = vld [vmem:[%s787_s8] ss:$0 sm:$0xff]  ;;  %s387_s28 = sshll.u32 %s676_s7, 4  ;;  %s388_s28 = int_to_ptr.vmem [resolvable:$true] %s387_s28 }
  0x22   :  { %273 = vmatpush.bf16.msra.mxu1 %v512_v14  ;;  %v539_v55 = vld [vmem:[%s789_s10] ss:$0 sm:$0xff] }
  0x23   :  { %369 = vmatpush.bf16.msra.mxu2 %v521_v21 }
  0x25   :  { %177 = vmatpush.bf16.msra.mxu0 %v503_v7 }
  0x26   :  { %274 = vmatpush.bf16.msra.mxu1 %v511_v15 }
  0x27   :  { %370 = vmatpush.bf16.msra.mxu2 %v520_v36 }
  0x29   :  { %178 = vmatpush.bf16.msra.mxu0 %v502_v8 }
  0x2a   :  { %275 = vmatpush.bf16.msra.mxu1 %v510_v16 }
  0x2b   :  { %371 = vmatpush.bf16.msra.mxu2 %v519_v37 }
  0x2d   :  { %179 = vmatpush.bf16.msra.mxu0 %v501_v9 }
  0x2e   :  { %276 = vmatpush.bf16.msra.mxu1 %v509_v17 }
  0x2f   :  { %372 = vmatpush.bf16.msra.mxu2 %v518_v38 }
  0x31   :  { %180 = vmatpush.bf16.msra.mxu0 %v500_v10 }
  0x32   :  { %277 = vmatpush.bf16.msra.mxu1 %v508_v18 }
  0x33   :  { %373 = vmatpush.bf16.msra.mxu2 %v517_v39 }
  0x34   :  { %181 = vmatmul.bf16.vlgmr.msra.gmra.mxu0 %v104_v13 }
  0x37   :  { %374 = vmatpush.bf16.msra.mxu2 %v516_v40 }
  0xb1   :  { %v182_v23 = vpop.f32.mrf.mxu0 }
  0xb2   :  { %v183_v24 = vadd.f32 %v533_v22, %v182_v23 }
  0xb4   :  { %v191_v26 = vmul.f32 %v534_v25, %v183_v24 }
  0xb6   :  { %v197_v31 = vadd.f32 %v535_v27, %v191_v26 }
  0xb8   :  { %v199_v33 = vmax.f32 %v197_v31, 0.0 }
  0xb9   :  { %v184_v28 = vpop.f32.mrf.mxu0 }
  0xba   :  { %v185_v29 = vadd.f32 %v533_v22, %v184_v28 }
  0xbc   :  { %v192_v30 = vmul.f32 %v534_v25, %v185_v29 }
  0xbe   :  { %v198_v32 = vadd.f32 %v535_v27, %v192_v30 }
  0xc0   :  { %v200_v34 = vmax.f32 %v198_v32, 0.0 }
  0xc2   :  { %v201_v35 = vpack.c.bf16 %v200_v34, %v199_v33 }
  0xc4   :  { %278 = vmatmul.bf16.vlgmr.msra.gmra.mxu1 %v201_v35 }
 0x141   :  { %v279_v42 = vpop.f32.mrf.mxu1 }
 0x142   :  { %v280_v43 = vadd.f32 %v536_v41, %v279_v42 }
 0x144   :  { %v288_v45 = vmul.f32 %v537_v44, %v280_v43 }
 0x146   :  { %v294_v50 = vadd.f32 %v538_v46, %v288_v45 }
 0x148   :  { %v296_v52 = vmax.f32 %v294_v50, 0.0 }
 0x149   :  { %v281_v47 = vpop.f32.mrf.mxu1 }
 0x14a   :  { %v282_v48 = vadd.f32 %v536_v41, %v281_v47 }
 0x14c   :  { %v289_v49 = vmul.f32 %v537_v44, %v282_v48 }
 0x14e   :  { %v295_v51 = vadd.f32 %v538_v46, %v289_v49 }
 0x150   :  { %v297_v53 = vmax.f32 %v295_v51, 0.0 }
 0x152   :  { %v298_v54 = vpack.c.bf16 %v297_v53, %v296_v52 }
 0x154   :  { %375 = vmatmul.bf16.vlgmr.msra.gmra.mxu2 %v298_v54 }
 0x1d7   :  { %v376_v56 = vpop.f32.mrf.mxu2 }
 0x1d8   :  { %v377_v57 = vadd.f32 %v539_v55, %v376_v56 }
 0x1da   :  { %381 = vst [vmem:[#allocation10] sm:$0xff] %v377_v57 }
 0x1df   :  { %v378_v58 = vpop.f32.mrf.mxu2 }
 0x1e0   :  { %v379_v59 = vadd.f32 %v539_v55, %v378_v58 }
 0x1e2   :  { %382 = vst [vmem:[#allocation10 + $0x8] sm:$0xff] %v379_v59 }
 0x1e3   :  { %395 = dma.vmem_to_hbm [thread:$0]  %s388_s28, 256, %s390_s12, [#allocation4], %s672_s29, %s672_s29, %s673_s30  }
 0x1e4   :  { %666 = dma.done.wait [#allocation4], 256  }
 0x1e5   :  { %667 = vsyncadd [#allocation4], 4294967040 }
 0x1e6   :  { %400 = vsyncpa [#allocation3], 1 }
 0x1e7   :  { %401 = vsyncpa [#allocation6], 1 }
 0x1e8   :  { %402 = vsyncpa [#allocation9], 1 }
 0x1e9   :  { %403 = vsyncpa [#allocation4], 1 }

</bundles_post_ra>
